<compile_context>
chip_gen: v5e
topology: v5e:2x2
jax: 0.10.0
libtpu: 0.0.40
codegen_flags: <defaults>
</compile_context>

<pallas_src>
import functools

import jax
import jax.numpy as jnp
from jax import lax
from jax.experimental import pallas as pl
from jax.experimental.pallas import tpu as pltpu


def _round_up(x, m):
    return ((x + m - 1) // m) * m


def _cdiv(a, b):
    return -(-a // b)


def _vmem_capacity_bytes():
    # Trace-time hardware query; fall back to 128 MiB (v5e/v6e) if unavailable.
    try:
        info = pltpu.get_tpu_info()
        cap = getattr(info, "vmem_capacity_bytes", None)
        if cap:
            return int(cap)
    except Exception:
        pass
    return 128 * 1024 * 1024


def _focal_loss_kernel(logits_ref, labels_ref, gathered_ref, lw_ref, acc_ref, *,
                       gamma, ignore_index, n_rows, tile_m, n_tiles, num_splits):
    c = pl.program_id(0)   # split index (one per TensorCore on v7x)
    j = pl.program_id(1)   # row-tile index within the split (round-robin deal)

    # Zero this split's accumulator block on its first iteration.
    @pl.when(j == 0)
    def _():
        acc_ref[...] = jnp.zeros_like(acc_ref)

    tile_idx = j * num_splits + c

    # Overhang tiles (redundant re-fetch of the clamped last block) skip all
    # compute and all accumulation.
    @pl.when(tile_idx < n_tiles)
    def _():
        logits = logits_ref[...].astype(jnp.float32)      # (TM, V)
        labels = labels_ref[...]                          # (TM, 1) int32
        gathered = gathered_ref[...]                      # (TM, 1) f32 (logit@label)
        label_w = lw_ref[...]                             # (TM, 1) f32

        # Row validity: label != ignore_index AND row inside the real array.
        row_ids = tile_idx * tile_m + lax.broadcasted_iota(
            jnp.int32, (tile_m, 1), 0)
        valid = jnp.logical_and(labels != ignore_index, row_ids < n_rows)

        # Numerically-stable log-softmax pieces (per-row).  Garbage tail rows
        # may yield NaN/Inf here, but only in per-row (TM,1) values, which the
        # final select removes exactly.
        row_max = jnp.max(logits, axis=-1, keepdims=True)                 # (TM,1)
        lse = jnp.log(jnp.sum(jnp.exp(logits - row_max),
                              axis=-1, keepdims=True))                    # (TM,1)

        log_pt = (gathered - row_max) - lse                               # (TM,1)
        pt = jnp.exp(log_pt)

        one_minus_pt = 1.0 - pt
        if gamma == 2.0:
            focal_w = one_minus_pt * one_minus_pt
        elif float(gamma).is_integer():
            focal_w = lax.integer_pow(one_minus_pt, int(gamma))
        else:
            focal_w = jnp.power(jnp.maximum(one_minus_pt, 0.0), gamma)

        # Select (not multiply) so NaN from garbage tail rows cannot leak.
        loss = jnp.where(valid, -(label_w * focal_w * log_pt), 0.0)       # (TM,1)

        loss_sum = jnp.sum(loss)
        cnt_sum = jnp.sum(valid.astype(jnp.float32))

        # Scatter this tile's partial sums into lane (j % 128) of the (8,128)
        # accumulator block: unmasked lane-dense store + shorter serial chains.
        lane = j % 128
        sub_ids = lax.broadcasted_iota(jnp.int32, (8, 128), 0)
        lane_ids = lax.broadcasted_iota(jnp.int32, (8, 128), 1)
        lane_sel = lane_ids == lane
        upd = jnp.where(jnp.logical_and(sub_ids == 0, lane_sel), loss_sum,
                        jnp.where(jnp.logical_and(sub_ids == 1, lane_sel),
                                  cnt_sum, 0.0))
        acc_ref[...] += upd


def focal_loss_pallas(logits, labels, token_weights, *, gamma=2.0,
                      ignore_index=-100, tile_m=None, num_splits=None):
    """logits: [B, S, V] float (any dtype); labels: [B, S] int;
    token_weights: [V] float. Returns scalar f32 mean focal loss."""
    B, S, V = logits.shape
    N = B * S
    if N == 0:
        return jnp.float32(0.0)

    flat_logits = logits.reshape(N, V)                    # keep native dtype
    flat_labels = labels.reshape(N, 1).astype(jnp.int32)

    # Wrapper-side O(N) gathers: per-row label weight and the logit at the
    # label (removes the in-kernel one-hot multiply + cross-lane reduce).
    valid = flat_labels[:, 0] != ignore_index
    safe = jnp.where(valid, flat_labels[:, 0], 0)
    label_w = jnp.take(token_weights.astype(jnp.float32), safe).reshape(N, 1)
    label_logit = jnp.take_along_axis(
        flat_logits, safe[:, None], axis=1).astype(jnp.float32)          # (N,1)

    vmem_cap = _vmem_capacity_bytes()
    # ~96 MiB on 128 MiB chips (v5e/v6e), ~48 MiB on v7x (64 MiB VMEM).
    vmem_limit = min((vmem_cap * 3) // 4, 96 * 1024 * 1024)

    itemsize = jnp.dtype(flat_logits.dtype).itemsize
    if tile_m is None:
        # Per-row working set: double-buffered native-dtype input tile plus
        # ~3 (TM, V) f32 temporaries (f32 cast, shifted, exp) regardless of
        # the input dtype.
        bytes_per_row = V * (2 * itemsize + 3 * 4)
        budget = (vmem_limit * 4) // 5
        tm = budget // max(bytes_per_row, 1)
        tm = (tm // 8) * 8
        tile_m = max(8, min(tm, 8192, _round_up(N, 8)))
    assert tile_m % 8 == 0, "tile_m must be a multiple of 8"

    n_tiles = _cdiv(N, tile_m)

    if num_splits is None:
        # 2 accumulator splits only where two TensorCores exist (v7x-class
        # chips with 64 MiB VMEM); single-TC chips keep one split.
        # TODO(synk): replace the VMEM heuristic with a proper core-count query.
        num_splits = 2 if vmem_cap <= 64 * 1024 * 1024 else 1
    num_splits = max(1, min(int(num_splits), n_tiles))
    tiles_per_split = _cdiv(n_tiles, num_splits)

    def row_map(c, j):
        # Round-robin deal of tiles over splits (balanced cores); clamp the
        # (compute-skipped) overhang so its DMA never indexes past the array.
        return (jnp.minimum(j * num_splits + c, n_tiles - 1), 0)

    kernel = functools.partial(
        _focal_loss_kernel, gamma=float(gamma), ignore_index=int(ignore_index),
        n_rows=N, tile_m=tile_m, n_tiles=n_tiles, num_splits=num_splits)

    acc = pl.pallas_call(
        kernel,
        out_shape=jax.ShapeDtypeStruct((num_splits * 8, 128), jnp.float32),
        grid_spec=pltpu.PrefetchScalarGridSpec(
            num_scalar_prefetch=0,
            grid=(num_splits, tiles_per_split),
            in_specs=[
                pl.BlockSpec((tile_m, V), row_map),
                pl.BlockSpec((tile_m, 1), row_map),
                pl.BlockSpec((tile_m, 1), row_map),
                pl.BlockSpec((tile_m, 1), row_map),
            ],
            out_specs=pl.BlockSpec((8, 128), lambda c, j: (c, 0)),
        ),
        compiler_params=pltpu.CompilerParams(
            dimension_semantics=("parallel", "arbitrary"),
            vmem_limit_bytes=int(vmem_limit)),
    )(flat_logits, flat_labels, label_logit, label_w)

    acc = acc.reshape(num_splits, 8, 128)
    loss_sum = jnp.sum(acc[:, 0, :])
    count = jnp.sum(acc[:, 1, :])
    # If no valid labels, return 0.0 (matches the PyTorch early-return).
    return jnp.where(count > 0, loss_sum / jnp.maximum(count, 1.0), 0.0)


def focal_loss_ref(logits, labels, token_weights, *, gamma=2.0,
                   ignore_index=-100):
    """Pure-JAX reference mirroring the PyTorch forward."""
    B, S, V = logits.shape
    fl = logits.reshape(-1, V).astype(jnp.float32)
    lb = labels.reshape(-1)
    valid = lb != ignore_index
    safe = jnp.where(valid, lb, 0)
    logsm = jax.nn.log_softmax(fl, axis=-1)
    log_pt = jnp.take_along_axis(logsm, safe[:, None], axis=1)[:, 0]
    pt = jnp.exp(log_pt)
    lw = token_weights.astype(jnp.float32)[safe]
    loss = -lw * (1.0 - pt) ** gamma * log_pt
    cnt = jnp.sum(valid.astype(jnp.float32))
    return jnp.where(cnt > 0,
                     jnp.sum(jnp.where(valid, loss, 0.0)) / jnp.maximum(cnt, 1.0),
                     0.0)


if __name__ == "__main__":
    key = jax.random.PRNGKey(0)
    gamma = 2.0
    ignore_index = -100
    class_weights = (0.3, 0.7)  # [weight for 'nee', weight for 'ja']
    V = 128

    # Synthetic deterministic tokenizer outputs (no real tokenizer available).
    # TODO(synk): real tokenizer('ja'/'nee') token ids replaced by fixed ids.
    ja_token_ids = [5, 6]
    nee_token_ids = [11]

    token_weights = jnp.ones((V,), jnp.float32)
    for tid in ja_token_ids:
        token_weights = token_weights.at[tid].set(class_weights[1])
    for tid in nee_token_ids:
        token_weights = token_weights.at[tid].set(class_weights[0])

    def make_case(k, B, S):
        k1, k2, k3 = jax.random.split(k, 3)
        lg = jax.random.normal(k1, (B, S, V), jnp.float32)
        lb = jax.random.randint(k2, (B, S), 0, V, jnp.int32)
        ign = jax.random.bernoulli(k3, 0.25, (B, S))
        lb = jnp.where(ign, ignore_index, lb)
        return lg, lb

    k0, k1, k2 = jax.random.split(key, 3)

    # Case 1: default auto tiling / auto splits, B=2, S=8.
    logits, labels = make_case(k0, 2, 8)
    out = focal_loss_pallas(logits, labels, token_weights,
                            gamma=gamma, ignore_index=ignore_index)
    out = jax.block_until_ready(out)
    ref = focal_loss_ref(logits, labels, token_weights,
                         gamma=gamma, ignore_index=ignore_index)
    assert jnp.allclose(out, ref, rtol=1e-5, atol=1e-5), (out, ref)

    # Case 2: uneven tail (N=14, tile_m=8) with a forced 2-way split.
    logits2, labels2 = make_case(k1, 2, 7)
    out2 = focal_loss_pallas(logits2, labels2, token_weights, gamma=gamma,
                             ignore_index=ignore_index, tile_m=8, num_splits=2)
    out2 = jax.block_until_ready(out2)
    ref2 = focal_loss_ref(logits2, labels2, token_weights,
                          gamma=gamma, ignore_index=ignore_index)
    assert jnp.allclose(out2, ref2, rtol=1e-5, atol=1e-5), (out2, ref2)

    # Case 3: bf16 logits passed without any wrapper-side upcast of the slab.
    logits_bf16 = logits.astype(jnp.bfloat16)
    out3 = focal_loss_pallas(logits_bf16, labels, token_weights,
                             gamma=gamma, ignore_index=ignore_index)
    out3 = jax.block_until_ready(out3)
    ref3 = focal_loss_ref(logits_bf16, labels, token_weights,
                          gamma=gamma, ignore_index=ignore_index)
    assert jnp.allclose(out3, ref3, rtol=1e-4, atol=1e-4), (out3, ref3)

    # Case 4: all positions ignored -> 0.0 (PyTorch early-return semantics).
    labels4 = jnp.full((2, 8), ignore_index, jnp.int32)
    out4 = focal_loss_pallas(logits, labels4, token_weights,
                             gamma=gamma, ignore_index=ignore_index)
    out4 = jax.block_until_ready(out4)
    assert jnp.allclose(out4, 0.0, atol=1e-7), out4

    # Case 5: odd tile count (3 tiles) with 2 splits -> one skipped overhang.
    logits5, labels5 = make_case(k2, 3, 8)
    out5 = focal_loss_pallas(logits5, labels5, token_weights, gamma=gamma,
                             ignore_index=ignore_index, tile_m=8, num_splits=2)
    out5 = jax.block_until_ready(out5)
    ref5 = focal_loss_ref(logits5, labels5, token_weights,
                          gamma=gamma, ignore_index=ignore_index)
    assert jnp.allclose(out5, ref5, rtol=1e-5, atol=1e-5), (out5, ref5)

    print("KERNEL_OK")
</pallas_src>

<mosaic_0001>
module attributes {stable_mosaic.version = 11 : i64} {
  func.func @_focal_loss_kernel(%arg0: i32, %arg1: i32, %arg2: memref<16x128xf32, #tpu.memory_space<vmem>>, %arg3: memref<16x1xi32, #tpu.memory_space<vmem>>, %arg4: memref<16x1xf32, #tpu.memory_space<vmem>>, %arg5: memref<16x1xf32, #tpu.memory_space<vmem>>, %arg6: memref<8x128xf32, #tpu.memory_space<vmem>>) attributes {dimension_semantics = [#tpu.dimension_semantics<parallel>, #tpu.dimension_semantics<arbitrary>], iteration_bounds = array<i64: 1, 1>, scalar_prefetch = 0 : i64, scratch_operands = 0 : i64, tpu.core_type = #tpu.core_type<tc>, window_params = [{transform_indices = @transform_0, window_bounds = array<i64: 16, 128>}, {transform_indices = @transform_1, window_bounds = array<i64: 16, 1>}, {transform_indices = @transform_2, window_bounds = array<i64: 16, 1>}, {transform_indices = @transform_3, window_bounds = array<i64: 16, 1>}, {transform_indices = @transform_4, window_bounds = array<i64: 8, 128>}]} {
    %c0_i32 = arith.constant 0 : i32
    %0 = arith.cmpi eq, %arg1, %c0_i32 : i32
    %1 = arith.extui %0 : i1 to i32
    %c0_i32_0 = arith.constant 0 : i32
    %2 = arith.cmpi ne, %1, %c0_i32_0 : i32
    scf.if %2 {
      %cst = arith.constant 0.000000e+00 : f32
      %8 = vector.broadcast %cst : f32 to vector<8x128xf32>
      %c0 = arith.constant 0 : index
      %c0_3 = arith.constant 0 : index
      %9 = vector.load %arg6[%c0, %c0_3] : memref<8x128xf32, #tpu.memory_space<vmem>>, vector<8x128xf32>
      tpu.vector_store %arg6[%c0, %c0_3], %8 {strides = array<i32>} : memref<8x128xf32, #tpu.memory_space<vmem>>, vector<8x128xf32>,
    } else {
    }
    %c1_i32 = arith.constant 1 : i32
    %3 = arith.muli %arg1, %c1_i32 : i32
    %4 = arith.addi %3, %arg0 : i32
    %c1_i32_1 = arith.constant 1 : i32
    %5 = arith.cmpi slt, %4, %c1_i32_1 : i32
    %6 = arith.extui %5 : i1 to i32
    %c0_i32_2 = arith.constant 0 : i32
    %7 = arith.cmpi ne, %6, %c0_i32_2 : i32
    scf.if %7 {
      %c0 = arith.constant 0 : index
      %c0_3 = arith.constant 0 : index
      %8 = vector.load %arg2[%c0, %c0_3] : memref<16x128xf32, #tpu.memory_space<vmem>>, vector<16x128xf32>
      %c0_4 = arith.constant 0 : index
      %c0_5 = arith.constant 0 : index
      %9 = vector.load %arg3[%c0_4, %c0_5] : memref<16x1xi32, #tpu.memory_space<vmem>>, vector<16x1xi32>
      %c0_6 = arith.constant 0 : index
      %c0_7 = arith.constant 0 : index
      %10 = vector.load %arg4[%c0_6, %c0_7] : memref<16x1xf32, #tpu.memory_space<vmem>>, vector<16x1xf32>
      %c0_8 = arith.constant 0 : index
      %c0_9 = arith.constant 0 : index
      %11 = vector.load %arg5[%c0_8, %c0_9] : memref<16x1xf32, #tpu.memory_space<vmem>>, vector<16x1xf32>
      %c16_i32 = arith.constant 16 : i32
      %12 = arith.muli %4, %c16_i32 : i32
      %13 = tpu.iota {dimensions = array<i32: 0>} : vector<16x1xi32>
      %14 = vector.broadcast %12 : i32 to vector<16x1xi32>
      %15 = arith.addi %14, %13 : vector<16x1xi32>
      %c-100_i32 = arith.constant -100 : i32
      %16 = vector.broadcast %c-100_i32 : i32 to vector<16x1xi32>
      %17 = arith.cmpi ne, %9, %16 : vector<16x1xi32>
      %c16_i32_10 = arith.constant 16 : i32
      %18 = vector.broadcast %c16_i32_10 : i32 to vector<16x1xi32>
      %19 = arith.cmpi slt, %15, %18 : vector<16x1xi32>
      %20 = arith.andi %17, %19 : vector<16x1xi1>
      %cst = arith.constant dense<0xFF800000> : vector<16xf32>
      %21 = vector.multi_reduction <maximumf>, %8, %cst [1] : vector<16x128xf32> to vector<16xf32>
      %22 = vector.shape_cast %21 : vector<16xf32> to vector<16x1xf32>
      %23 = vector.broadcast %22 : vector<16x1xf32> to vector<16x128xf32>
      %24 = arith.subf %8, %23 : vector<16x128xf32>
      %25 = math.exp %24 : vector<16x128xf32>
      %cst_11 = arith.constant dense<0.000000e+00> : vector<16xf32>
      %26 = vector.multi_reduction <add>, %25, %cst_11 [1] : vector<16x128xf32> to vector<16xf32>
      %27 = vector.shape_cast %26 : vector<16xf32> to vector<16x1xf32>
      %28 = math.log %27 : vector<16x1xf32>
      %29 = arith.subf %10, %22 : vector<16x1xf32>
      %30 = arith.subf %29, %28 : vector<16x1xf32>
      %31 = math.exp %30 : vector<16x1xf32>
      %cst_12 = arith.constant 1.000000e+00 : f32
      %32 = vector.broadcast %cst_12 : f32 to vector<16x1xf32>
      %33 = arith.subf %32, %31 : vector<16x1xf32>
      %34 = arith.mulf %33, %33 : vector<16x1xf32>
      %35 = arith.mulf %11, %34 : vector<16x1xf32>
      %36 = arith.mulf %35, %30 : vector<16x1xf32>
      %cst_13 = arith.constant 0.000000e+00 : f32
      %37 = vector.broadcast %cst_13 : f32 to vector<16x1xf32>
      %38 = arith.subf %37, %36 : vector<16x1xf32>
      %cst_14 = arith.constant 0.000000e+00 : f32
      %39 = vector.broadcast %cst_14 : f32 to vector<16x1xf32>
      %40 = arith.select %20, %38, %39 : vector<16x1xi1>, vector<16x1xf32>
      %41 = vector.shape_cast %40 : vector<16x1xf32> to vector<1x16x1xf32>
      %cst_15 = arith.constant dense<0.000000e+00> : vector<1xf32>
      %42 = vector.multi_reduction <add>, %41, %cst_15 [1, 2] : vector<1x16x1xf32> to vector<1xf32>
      %43 = vector.shape_cast %42 : vector<1xf32> to vector<1x1x1xf32>
      %44 = vector.extract %43[0, 0, 0] : f32 from vector<1x1x1xf32>
      %45 = arith.extui %20 : vector<16x1xi1> to vector<16x1xi32>
      %46 = arith.sitofp %45 : vector<16x1xi32> to vector<16x1xf32>
      %47 = vector.shape_cast %46 : vector<16x1xf32> to vector<1x16x1xf32>
      %cst_16 = arith.constant dense<0.000000e+00> : vector<1xf32>
      %48 = vector.multi_reduction <add>, %47, %cst_16 [1, 2] : vector<1x16x1xf32> to vector<1xf32>
      %49 = vector.shape_cast %48 : vector<1xf32> to vector<1x1x1xf32>
      %50 = vector.extract %49[0, 0, 0] : f32 from vector<1x1x1xf32>
      %c128_i32 = arith.constant 128 : i32
      %c0_i32_17 = arith.constant 0 : i32
      %51 = arith.cmpi eq, %c128_i32, %c0_i32_17 : i32
      %c1_i32_18 = arith.constant 1 : i32
      %52 = arith.select %51, %c1_i32_18, %c128_i32 : i32
      %53 = arith.remsi %arg1, %52 : i32
      %c0_i32_19 = arith.constant 0 : i32
      %54 = arith.cmpi ne, %53, %c0_i32_19 : i32
      %c0_i32_20 = arith.constant 0 : i32
      %55 = arith.cmpi slt, %53, %c0_i32_20 : i32
      %c0_i32_21 = arith.constant 0 : i32
      %56 = arith.cmpi slt, %52, %c0_i32_21 : i32
      %57 = arith.xori %55, %56 : i1
      %58 = arith.andi %57, %54 : i1
      %59 = arith.addi %53, %52 : i32
      %60 = arith.select %58, %59, %53 : i32
      %61 = tpu.iota {dimensions = array<i32: 0>} : vector<8x128xi32>
      %62 = tpu.iota {dimensions = array<i32: 1>} : vector<8x128xi32>
      %63 = vector.broadcast %60 : i32 to vector<8x128xi32>
      %64 = arith.cmpi eq, %62, %63 : vector<8x128xi32>
      %c0_i32_22 = arith.constant 0 : i32
      %65 = vector.broadcast %c0_i32_22 : i32 to vector<8x128xi32>
      %66 = arith.cmpi eq, %61, %65 : vector<8x128xi32>
      %67 = arith.andi %66, %64 : vector<8x128xi1>
      %c1_i32_23 = arith.constant 1 : i32
      %68 = vector.broadcast %c1_i32_23 : i32 to vector<8x128xi32>
      %69 = arith.cmpi eq, %61, %68 : vector<8x128xi32>
      %70 = arith.andi %69, %64 : vector<8x128xi1>
      %cst_24 = arith.constant 0.000000e+00 : f32
      %71 = vector.broadcast %50 : f32 to vector<8x128xf32>
      %72 = vector.broadcast %cst_24 : f32 to vector<8x128xf32>
      %73 = arith.select %70, %71, %72 : vector<8x128xi1>, vector<8x128xf32>
      %74 = vector.broadcast %44 : f32 to vector<8x128xf32>
      %75 = arith.select %67, %74, %73 : vector<8x128xi1>, vector<8x128xf32>
      %c0_25 = arith.constant 0 : index
      %c0_26 = arith.constant 0 : index
      %76 = vector.load %arg6[%c0_25, %c0_26] : memref<8x128xf32, #tpu.memory_space<vmem>>, vector<8x128xf32>
      %77 = arith.addf %76, %75 : vector<8x128xf32>
      %c0_27 = arith.constant 0 : index
      %c0_28 = arith.constant 0 : index
      %78 = vector.load %arg6[%c0_27, %c0_28] : memref<8x128xf32, #tpu.memory_space<vmem>>, vector<8x128xf32>
      tpu.vector_store %arg6[%c0_27, %c0_28], %77 {strides = array<i32>} : memref<8x128xf32, #tpu.memory_space<vmem>>, vector<8x128xf32>,
    } else {
    }
    return
  }
  func.func @transform_0(%arg0: i32, %arg1: i32) -> (i32, i32) {
    %c1_i32 = arith.constant 1 : i32
    %0 = arith.muli %arg1, %c1_i32 : i32
    %1 = arith.addi %0, %arg0 : i32
    %c0_i32 = arith.constant 0 : i32
    %2 = arith.minsi %1, %c0_i32 : i32
    %c0_i32_0 = arith.constant 0 : i32
    %c0_i32_1 = arith.constant 0 : i32
    return %2, %c0_i32_0 : i32, i32
  }
  func.func @transform_1(%arg0: i32, %arg1: i32) -> (i32, i32) {
    %c1_i32 = arith.constant 1 : i32
    %0 = arith.muli %arg1, %c1_i32 : i32
    %1 = arith.addi %0, %arg0 : i32
    %c0_i32 = arith.constant 0 : i32
    %2 = arith.minsi %1, %c0_i32 : i32
    %c0_i32_0 = arith.constant 0 : i32
    %c0_i32_1 = arith.constant 0 : i32
    return %2, %c0_i32_0 : i32, i32
  }
  func.func @transform_2(%arg0: i32, %arg1: i32) -> (i32, i32) {
    %c1_i32 = arith.constant 1 : i32
    %0 = arith.muli %arg1, %c1_i32 : i32
    %1 = arith.addi %0, %arg0 : i32
    %c0_i32 = arith.constant 0 : i32
    %2 = arith.minsi %1, %c0_i32 : i32
    %c0_i32_0 = arith.constant 0 : i32
    %c0_i32_1 = arith.constant 0 : i32
    return %2, %c0_i32_0 : i32, i32
  }
  func.func @transform_3(%arg0: i32, %arg1: i32) -> (i32, i32) {
    %c1_i32 = arith.constant 1 : i32
    %0 = arith.muli %arg1, %c1_i32 : i32
    %1 = arith.addi %0, %arg0 : i32
    %c0_i32 = arith.constant 0 : i32
    %2 = arith.minsi %1, %c0_i32 : i32
    %c0_i32_0 = arith.constant 0 : i32
    %c0_i32_1 = arith.constant 0 : i32
    return %2, %c0_i32_0 : i32, i32
  }
  func.func @transform_4(%arg0: i32, %arg1: i32) -> (i32, i32) {
    %c0_i32 = arith.constant 0 : i32
    %c0_i32_0 = arith.constant 0 : i32
    return %arg0, %c0_i32 : i32, i32
  }
}

</mosaic_0001>

<bundles_post_ra>
// kernel: tpu_custom_call.1
= control target key start
LH: loop header
LB: loop body
LE: loop exit
PB: predicated region body
PF: predicated region fallthrough
CT: control target
= control target key end

     0   :  { %s407_s0 = inlined_call_operand.vmem [shape: f32[16,128], index: 0, kind: input, shape index: {}]   ;;  %s408_s1 = inlined_call_operand.vmem [shape: s32[16,1], index: 1, kind: input, shape index: {}]   ;;  %s409_s2 = inlined_call_operand.vmem [shape: f32[16,1], index: 2, kind: input, shape index: {}]   ;;  %s410_s3 = inlined_call_operand.vmem [shape: f32[16,1], index: 3, kind: input, shape index: {}]   ;;  %s411_s4 = inlined_call_operand.hbm [shape: f32[8,128], index: 4, kind: output, shape index: {}]  }
   0x1   :  { %v156_v0 = vld [vmem:[%s407_s0] sm:$0xff] }
   0x2   :  { %177 = vmax.xlane.f32.xlu0 %v156_v0 }
   0x3   :  { %9 = vsyncpa [#allocation3], 0  ;;  %v157_v1 = vld [vmem:[%s407_s0 + $0x8] sm:$0xff]  ;;  %v160_v11 = vld [vmem:[%s409_s2] sm:$0xff]  ;;  %vm215_vm2 = vcmask 7168   ;;  %v353_v45 = vmov 0.0  }
   0x4   :  { %v161_v18 = vld [vmem:[%s409_s2 + $0x8] sm:$0xff]  ;;  %v162_v26 = vld [vmem:[%s410_s3] sm:$0xff]  ;;  %s354_s29 = smov [#allocation2]   ;;  %s274_s7 = sshll.u32 %s411_s4, 4  ;;  %s275_s7 = int_to_ptr.hbm [resolvable:$true] %s274_s7 }
   0x5   :  { %v163_v32 = vld [vmem:[%s410_s3 + $0x8] sm:$0xff]  ;;  %v158_v34 = vld [vmem:[%s408_s1] sm:$0xff]  ;;  %s272_s30 = sshll.u32 %s354_s29, 4  ;;  %s273_s30 = int_to_ptr.vmem [resolvable:$true] %s272_s30 }
   0x6   :  { %v159_v35 = vld [vmem:[%s408_s1 + $0x8] sm:$0xff]  ;;  %vm171_vm0 = vcmp.ne.s32.totalorder %v158_v34, 4294967196 }
   0x7   :  { %vm172_vm1 = vcmp.ne.s32.totalorder %v159_v35, 4294967196  ;;  %v307_v46 = vsel %vm171_vm0, 1.0, %v353_v45 }
   0x8   :  { %v308_v47 = vsel %vm172_vm1, 1.0, %v353_v45  ;;  %v232_v48 = vsel %vm215_vm2, %v307_v46, 0.0 }
   0x9   :  { %v233_v49 = vsel %vm215_vm2, %v308_v47, 0.0 }
   0xa   :  { %179 = vmax.xlane.f32.xlu0 %v157_v1  ;;  %v234_v50 = vadd.f32 %v233_v49, %v232_v48 }
  0x75   :  { %v178_v2 = vpop.xlane.xlu0 %177 }
  0x76   :  { %v181_v3 = vsub.f32 %v156_v0, %v178_v2  ;;  %v195_v13 = vsub.f32 %v160_v11, %v178_v2 }
  0x78   :  { %v183_v4 = vmul.f32 1.442695, %v181_v3 }
  0x7a   :  { %315 = vpow2.f32 %v183_v4 }
  0x7d   :  { %v180_v5 = vpop.xlane.xlu0 %179 }
  0x7e   :  { %v182_v6 = vsub.f32 %v157_v1, %v180_v5  ;;  %v196_v20 = vsub.f32 %v161_v18, %v180_v5  ;;  %v165_v1 = vlaneseq }
  0x80   :  { %v316_v7 = vpop.eup %315  ;;  %v185_v8 = vmul.f32 1.442695, %v182_v6  ;;  %v166_v2 = vshrl.u32 %v165_v1, 7  ;;  %v253_v3 = vand.u32 127, %v165_v1 }
  0x81   :  { %187 = vadd.xlane.f32.xlu1 %v316_v7 }
  0x82   :  { %317 = vpow2.f32 %v185_v8  ;;  %vm255_vm3 = vcmp.eq.s32.totalorder %v253_v3, 0  ;;  %vm258_vm4 = vcmp.eq.s32.totalorder %v166_v2, 1  ;;  %vm256_vm5 = vcmp.eq.s32.totalorder %v166_v2, 0 }
  0x83   :  { %vm259_vm6 = vmand %vm258_vm4, %vm255_vm3 }
  0x84   :  { %vm257_vm7 = vmand %vm256_vm5, %vm255_vm3 }
  0x88   :  { %v318_v9 = vpop.eup %317 }
  0x89   :  { %189 = vadd.xlane.f32.xlu1 %v318_v9 }
  0xf4   :  { %v188_v10 = vpop.xlane.xlu1 %187 }
  0xf5   :  { %319 = vlog2.f32 %v188_v10 }
  0xfb   :  { %v320_v12 = vpop.eup %319 }
  0xfc   :  { %v192_v14 = vmul.f32 0.6931472, %v320_v12  ;;  %v190_v15 = vpop.xlane.xlu1 %189 }
  0xfd   :  { %321 = vlog2.f32 %v190_v15 }
  0xfe   :  { %v197_v16 = vsub.f32 %v195_v13, %v192_v14 }
 0x100   :  { %v199_v17 = vmul.f32 1.442695, %v197_v16 }
 0x102   :  { %323 = vpow2.f32 %v199_v17 }
 0x103   :  { %v322_v19 = vpop.eup %321 }
 0x104   :  { %v194_v21 = vmul.f32 0.6931472, %v322_v19 }
 0x106   :  { %v198_v22 = vsub.f32 %v196_v20, %v194_v21 }
 0x108   :  { %v324_v23 = vpop.eup %323  ;;  %v201_v24 = vmul.f32 1.442695, %v198_v22 }
 0x109   :  { %v203_v25 = vsub.f32 1.0, %v324_v23 }
 0x10a   :  { %325 = vpow2.f32 %v201_v24 }
 0x10b   :  { %v205_v27 = vmul.f32 %v203_v25, %v203_v25 }
 0x10d   :  { %v207_v28 = vmul.f32 %v205_v27, %v162_v26 }
 0x10f   :  { %v209_v31 = vmul.f32 %v207_v28, %v197_v16 }
 0x110   :  { %v326_v29 = vpop.eup %325 }
 0x111   :  { %v204_v30 = vsub.f32 1.0, %v326_v29  ;;  %v211_v37 = vsub.f32 0.0, %v209_v31 }
 0x113   :  { %v206_v33 = vmul.f32 %v204_v30, %v204_v30  ;;  %v213_v40 = vsel %vm171_vm0, %v211_v37, 0.0 }
 0x114   :  { %v216_v42 = vsel %vm215_vm2, %v213_v40, 0.0 }
 0x115   :  { %v208_v36 = vmul.f32 %v206_v33, %v163_v32 }
 0x117   :  { %v210_v38 = vmul.f32 %v208_v36, %v198_v22 }
 0x119   :  { %v212_v39 = vsub.f32 0.0, %v210_v38 }
 0x11b   :  { %v214_v41 = vsel %vm172_vm1, %v212_v39, 0.0 }
 0x11c   :  { %v217_v43 = vsel %vm215_vm2, %v214_v41, 0.0 }
 0x11d   :  { %v218_v44 = vadd.f32 %v217_v43, %v216_v42 }
 0x11f   :  { %219 = vadd.xlane.f32.xlu2 %v218_v44 }
 0x127   :  { %235 = vadd.xlane.f32.xlu2 %v234_v50 }
 0x192   :  { %v220_v51 = vpop.xlane.xlu2 %219 }
 0x193   :  { %v221_v52 = vrot.slane %v220_v51, 4 }
 0x195   :  { %v222_v53 = vadd.f32 %v221_v52, %v220_v51 }
 0x197   :  { %v223_v54 = vrot.slane %v222_v53, 2 }
 0x199   :  { %v224_v55 = vadd.f32 %v223_v54, %v222_v53 }
 0x19a   :  { %v236_v56 = vpop.xlane.xlu2 %235 }
 0x19b   :  { %v237_v57 = vrot.slane %v236_v56, 4  ;;  %v225_v58 = vrot.slane %v224_v55, 1 }
 0x19d   :  { %v238_v59 = vadd.f32 %v237_v57, %v236_v56  ;;  %v226_v60 = vadd.f32 %v225_v58, %v224_v55 }
 0x19f   :  { %v239_v61 = vrot.slane %v238_v59, 2  ;;  %309 = vpush %v226_v60 }
 0x1a1   :  { %v240_v62 = vadd.f32 %v239_v61, %v238_v59 }
 0x1a3   :  { %v241_v63 = vrot.slane %v240_v62, 1 }
 0x1a5   :  { %v242_v0 = vadd.f32 %v241_v63, %v240_v62 }
 0x1a7   :  { %311 = vpush %v242_v0 }
 0x1d0   :  { %s310_s1 = spop %309 }
 0x1d1   :  { %v262_v5 = vstv %s310_s1 }
 0x1d8   :  { %s312_s3 = spop %311 }
 0x1d9   :  { %v260_v4 = vstv %s312_s3 }
 0x1da   :  { %v261_v6 = vsel %vm259_vm6, %v260_v4, 0.0 }
 0x1db   :  { %v263_v7 = vsel %vm257_vm7, %v262_v5, %v261_v6 }
 0x1dc   :  { %266 = vst [vmem:[#allocation2] sm:$0xff] %v263_v7 }
 0x1dd   :  { %277 = dma.vmem_to_hbm [thread:$0]  %s273_s30, 128, %s275_s7, [#allocation3]  }
 0x1de   :  { %351 = dma.done.wait [#allocation3], 128  }
 0x1df   :  { %352 = vsyncadd [#allocation3], 4294967168 }
 0x1e0   :  { %282 = vsyncpa [#allocation3], 1 }

</bundles_post_ra>
